<compile_context>
chip_gen: v5e
topology: v5e:2x2
jax: 0.10.0
libtpu: 0.0.40
codegen_flags: <defaults>
</compile_context>

<pallas_src>
import jax
import jax.numpy as jnp
from jax.experimental import pallas as pl
from jax.experimental.pallas import tpu as pltpu


# --------------------------------------------------------------------------
# Fused CLIP forward kernel (single program).
# --------------------------------------------------------------------------
def _clip_fused_kernel(ids_ref, table_ref, tw_ref, tb_ref,
                       x_ref, mask_ref, wq_ref, wk_ref, wv_ref, wo_ref,
                       text_out_ref, seq_out_ref):
    # ---------------- text branch ----------------
    # ids_ref : (B, T, 1) int32   table_ref : (V, De)
    # tw_ref  : (De, D)           tb_ref    : (1, D)
    B, T, _ = ids_ref.shape
    V, De = table_ref.shape
    D = tw_ref.shape[1]

    ids = ids_ref[...].reshape(B * T, 1)                                  # (B*T, 1)
    iota_v = jax.lax.broadcasted_iota(jnp.int32, (B * T, V), 1)           # (B*T, V)
    onehot = (iota_v == ids).astype(jnp.float32)                          # (B*T, V)
    # Embedding gather as one-hot matmul on the MXU (no HBM intermediate).
    emb = jnp.dot(onehot, table_ref[...],
                  preferred_element_type=jnp.float32)                     # (B*T, De)
    h = jnp.dot(emb, tw_ref[...], preferred_element_type=jnp.float32)     # (B*T, D)
    h = jnp.tanh(h + tb_ref[...])                                         # (B*T, D)
    text_out_ref[...] = jnp.mean(h.reshape(B, T, D), axis=1)              # (B, D)

    # ---------------- sequence branch ----------------
    # x_ref : (B, L, Din)  mask_ref : (B, 1, L)  wq/wk/wv : (Din, D)  wo : (D, D)
    _, L, Din = x_ref.shape
    xf = x_ref[...].reshape(B * L, Din)                                   # (B*L, Din)
    q = jnp.dot(xf, wq_ref[...], preferred_element_type=jnp.float32).reshape(B, L, D)
    k = jnp.dot(xf, wk_ref[...], preferred_element_type=jnp.float32).reshape(B, L, D)
    v = jnp.dot(xf, wv_ref[...], preferred_element_type=jnp.float32).reshape(B, L, D)

    # scores: contract last dims directly (no transposed K materialization).
    scale = jnp.float32(1.0 / (float(D) ** 0.5))
    scores = jnp.einsum('bqd,bkd->bqk', q, k,
                        preferred_element_type=jnp.float32)               # (B, L, L)
    scores = scores * scale + mask_ref[...] * jnp.float32(-1e9)           # mask padded keys

    scores = scores - jnp.max(scores, axis=-1, keepdims=True)
    p = jnp.exp(scores)
    denom = jnp.sum(p, axis=-1, keepdims=True)
    p = p * pl.reciprocal(denom, approx=True)                             # softmax (EUP recip)

    attn = jnp.einsum('bqk,bkd->bqd', p, v,
                      preferred_element_type=jnp.float32)                 # (B, L, D)
    # CLIPModel mean over dim=1, folded BEFORE the output projection:
    #   mean_L(attn @ Wo) == mean_L(attn) @ Wo
    pooled = jnp.mean(attn, axis=1)                                       # (B, D)
    seq_out_ref[...] = jnp.dot(pooled, wo_ref[...],
                               preferred_element_type=jnp.float32)        # (B, D)


# --------------------------------------------------------------------------
# CLIPModel forward (single fused pallas_call, two outputs)
# --------------------------------------------------------------------------
def clip_forward(params, text_input, sequence_input, padding_mask):
    """
    text_input     : (B, T)  int32 token ids
    sequence_input : (B, L, D_in) float32 residue features
    padding_mask   : (B, L)  bool, True = padded position
    returns (text_embeddings (B, D), sequence_embeddings (B, D))
    """
    B, T = text_input.shape
    _, L, Din = sequence_input.shape
    V, De = params["text_embed_table"].shape
    D = params["text_w"].shape[1]

    ids3 = text_input.astype(jnp.int32)[..., None]                        # (B, T, 1)
    mask3 = padding_mask.astype(jnp.float32)[:, None, :]                  # (B, 1, L)

    text_emb, seq_emb = pl.pallas_call(
        _clip_fused_kernel,
        out_shape=(jax.ShapeDtypeStruct((B, D), jnp.float32),
                   jax.ShapeDtypeStruct((B, D), jnp.float32)),
        grid=(1,),
        in_specs=[
            pl.BlockSpec((B, T, 1), lambda i: (0, 0, 0)),     # token ids
            pl.BlockSpec((V, De), lambda i: (0, 0)),          # embed table
            pl.BlockSpec((De, D), lambda i: (0, 0)),          # text_w
            pl.BlockSpec((1, D), lambda i: (0, 0)),           # text_b
            pl.BlockSpec((B, L, Din), lambda i: (0, 0, 0)),   # sequence features
            pl.BlockSpec((B, 1, L), lambda i: (0, 0, 0)),     # padding mask
            pl.BlockSpec((Din, D), lambda i: (0, 0)),         # wq
            pl.BlockSpec((Din, D), lambda i: (0, 0)),         # wk
            pl.BlockSpec((Din, D), lambda i: (0, 0)),         # wv
            pl.BlockSpec((D, D), lambda i: (0, 0)),           # wo
        ],
        out_specs=(
            pl.BlockSpec((B, D), lambda i: (0, 0)),           # text embeddings
            pl.BlockSpec((B, D), lambda i: (0, 0)),           # sequence embeddings
        ),
        compiler_params=pltpu.CompilerParams(
            dimension_semantics=("arbitrary",)),
    )(ids3, params["text_embed_table"], params["text_w"], params["text_b"],
      sequence_input, mask3,
      params["seq_wq"], params["seq_wk"], params["seq_wv"], params["seq_wo"])

    return text_emb, seq_emb


# --------------------------------------------------------------------------
# Pure-JAX reference (for correctness check only)
# --------------------------------------------------------------------------
def clip_forward_ref(params, text_input, sequence_input, padding_mask):
    emb = jnp.take(params["text_embed_table"], text_input, axis=0)        # (B, T, De)
    h = jnp.tanh(emb @ params["text_w"] + params["text_b"])               # (B, T, D)
    text_emb = jnp.mean(h, axis=1)                                        # (B, D)

    x = sequence_input
    q = x @ params["seq_wq"]
    k = x @ params["seq_wk"]
    v = x @ params["seq_wv"]
    D = q.shape[-1]
    s = jnp.einsum('bqd,bkd->bqk', q, k) / jnp.sqrt(jnp.float32(D))
    s = s + padding_mask.astype(jnp.float32)[:, None, :] * jnp.float32(-1e9)
    p = jax.nn.softmax(s, axis=-1)
    attn = jnp.einsum('bqk,bkd->bqd', p, v)                               # (B, L, D)
    seq_out = attn @ params["seq_wo"]                                     # (B, L, D)
    seq_emb = jnp.mean(seq_out, axis=1)                                   # (B, D)
    return text_emb, seq_emb


def init_params(key, vocab=128, d_emb=128, d_model=128, d_in=128):
    ks = jax.random.split(key, 6)
    s = lambda k, shape, fan_in: (jax.random.normal(k, shape, jnp.float32)
                                  / jnp.sqrt(jnp.float32(fan_in)))
    return {
        "text_embed_table": s(ks[0], (vocab, d_emb), d_emb),
        "text_w": s(ks[1], (d_emb, d_model), d_emb),
        "text_b": jnp.zeros((1, d_model), jnp.float32),
        "seq_wq": s(ks[2], (d_in, d_model), d_in),
        "seq_wk": s(ks[3], (d_in, d_model), d_in),
        "seq_wv": s(ks[4], (d_in, d_model), d_in),
        "seq_wo": s(ks[5], (d_model, d_model), d_model),
    }


if __name__ == "__main__":
    key = jax.random.PRNGKey(0)
    k_par, k_txt, k_seq = jax.random.split(key, 3)

    # Lane-dense model dims (multiples of 128), small batch/sequence.
    B, T, L = 2, 8, 8
    V, De, D, Din = 128, 128, 128, 128
    params = init_params(k_par, vocab=V, d_emb=De, d_model=D, d_in=Din)

    text_input = jax.random.randint(k_txt, (B, T), 0, V, dtype=jnp.int32)
    sequence_input = jax.random.normal(k_seq, (B, L, Din), jnp.float32)
    # last 3 positions of sample 1 are padded
    padding_mask = jnp.array(
        [[False] * L,
         [False] * (L - 3) + [True] * 3], dtype=bool)

    text_emb, seq_emb = jax.jit(clip_forward)(
        params, text_input, sequence_input, padding_mask)
    jax.block_until_ready((text_emb, seq_emb))

    # Correctness vs pure-JAX reference (approx reciprocal -> loose tol).
    text_ref, seq_ref = jax.jit(clip_forward_ref)(
        params, text_input, sequence_input, padding_mask)
    jax.block_until_ready((text_ref, seq_ref))

    assert text_emb.shape == (B, D) and seq_emb.shape == (B, D)
    assert bool(jnp.all(jnp.isfinite(text_emb))) and bool(jnp.all(jnp.isfinite(seq_emb)))
    assert bool(jnp.allclose(text_emb, text_ref, rtol=1e-2, atol=1e-2))
    assert bool(jnp.allclose(seq_emb, seq_ref, rtol=1e-2, atol=1e-2))
    print("KERNEL_OK")
</pallas_src>

<mosaic_0001>
module attributes {stable_mosaic.version = 11 : i64} {
  func.func @_clip_fused_kernel(%arg0: i32, %arg1: memref<2x8x1xi32, #tpu.memory_space<vmem>>, %arg2: memref<128x128xf32, #tpu.memory_space<vmem>>, %arg3: memref<128x128xf32, #tpu.memory_space<vmem>>, %arg4: memref<1x128xf32, #tpu.memory_space<vmem>>, %arg5: memref<2x8x128xf32, #tpu.memory_space<vmem>>, %arg6: memref<2x1x8xf32, #tpu.memory_space<vmem>>, %arg7: memref<128x128xf32, #tpu.memory_space<vmem>>, %arg8: memref<128x128xf32, #tpu.memory_space<vmem>>, %arg9: memref<128x128xf32, #tpu.memory_space<vmem>>, %arg10: memref<128x128xf32, #tpu.memory_space<vmem>>, %arg11: memref<2x128xf32, #tpu.memory_space<vmem>>, %arg12: memref<2x128xf32, #tpu.memory_space<vmem>>) attributes {dimension_semantics = [#tpu.dimension_semantics<arbitrary>], iteration_bounds = array<i64: 1>, scalar_prefetch = 0 : i64, scratch_operands = 0 : i64, tpu.core_type = #tpu.core_type<tc>, window_params = [{pipeline_mode = #tpu.pipeline_mode<synchronous>, transform_indices = @transform_0, window_bounds = array<i64: 2, 8, 1>}, {pipeline_mode = #tpu.pipeline_mode<synchronous>, transform_indices = @transform_1, window_bounds = array<i64: 128, 128>}, {pipeline_mode = #tpu.pipeline_mode<synchronous>, transform_indices = @transform_2, window_bounds = array<i64: 128, 128>}, {pipeline_mode = #tpu.pipeline_mode<synchronous>, transform_indices = @transform_3, window_bounds = array<i64: 1, 128>}, {pipeline_mode = #tpu.pipeline_mode<synchronous>, transform_indices = @transform_4, window_bounds = array<i64: 2, 8, 128>}, {pipeline_mode = #tpu.pipeline_mode<synchronous>, transform_indices = @transform_5, window_bounds = array<i64: 2, 1, 8>}, {pipeline_mode = #tpu.pipeline_mode<synchronous>, transform_indices = @transform_6, window_bounds = array<i64: 128, 128>}, {pipeline_mode = #tpu.pipeline_mode<synchronous>, transform_indices = @transform_7, window_bounds = array<i64: 128, 128>}, {pipeline_mode = #tpu.pipeline_mode<synchronous>, transform_indices = @transform_8, window_bounds = array<i64: 128, 128>}, {pipeline_mode = #tpu.pipeline_mode<synchronous>, transform_indices = @transform_9, window_bounds = array<i64: 128, 128>}, {pipeline_mode = #tpu.pipeline_mode<synchronous>, transform_indices = @transform_10, window_bounds = array<i64: 2, 128>}, {pipeline_mode = #tpu.pipeline_mode<synchronous>, transform_indices = @transform_11, window_bounds = array<i64: 2, 128>}]} {
    %c0 = arith.constant 0 : index
    %c0_0 = arith.constant 0 : index
    %c0_1 = arith.constant 0 : index
    %0 = vector.load %arg1[%c0, %c0_0, %c0_1] : memref<2x8x1xi32, #tpu.memory_space<vmem>>, vector<2x8x1xi32>
    %1 = vector.shape_cast %0 : vector<2x8x1xi32> to vector<16x1xi32>
    %2 = tpu.iota {dimensions = array<i32: 1>} : vector<16x128xi32>
    %3 = vector.broadcast %1 : vector<16x1xi32> to vector<16x128xi32>
    %4 = arith.cmpi eq, %2, %3 : vector<16x128xi32>
    %5 = arith.extui %4 : vector<16x128xi1> to vector<16x128xi32>
    %6 = arith.sitofp %5 : vector<16x128xi32> to vector<16x128xf32>
    %c0_2 = arith.constant 0 : index
    %c0_3 = arith.constant 0 : index
    %7 = vector.load %arg2[%c0_2, %c0_3] : memref<128x128xf32, #tpu.memory_space<vmem>>, vector<128x128xf32>
    %cst = arith.constant dense<0.000000e+00> : vector<16x128xf32>
    %8 = tpu.matmul %6, %7, %cst {dimension_numbers = #tpu.dot_dimension_numbers<[1], [0], [0], [1], [0, 0, 1, 1], [], []>} : vector<16x128xf32>, vector<128x128xf32>, vector<16x128xf32> -> vector<16x128xf32>
    %c0_4 = arith.constant 0 : index
    %c0_5 = arith.constant 0 : index
    %9 = vector.load %arg3[%c0_4, %c0_5] : memref<128x128xf32, #tpu.memory_space<vmem>>, vector<128x128xf32>
    %cst_6 = arith.constant dense<0.000000e+00> : vector<16x128xf32>
    %10 = tpu.matmul %8, %9, %cst_6 {dimension_numbers = #tpu.dot_dimension_numbers<[1], [0], [0], [1], [0, 0, 1, 1], [], []>} : vector<16x128xf32>, vector<128x128xf32>, vector<16x128xf32> -> vector<16x128xf32>
    %c0_7 = arith.constant 0 : index
    %c0_8 = arith.constant 0 : index
    %11 = vector.load %arg4[%c0_7, %c0_8] : memref<1x128xf32, #tpu.memory_space<vmem>>, vector<1x128xf32>
    %12 = vector.broadcast %11 : vector<1x128xf32> to vector<16x128xf32>
    %13 = arith.addf %10, %12 : vector<16x128xf32>
    %14 = math.tanh %13 : vector<16x128xf32>
    %15 = vector.shape_cast %14 : vector<16x128xf32> to vector<2x8x128xf32>
    %cst_9 = arith.constant dense<0.000000e+00> : vector<2x128xf32>
    %16 = vector.multi_reduction <add>, %15, %cst_9 [1] : vector<2x8x128xf32> to vector<2x128xf32>
    %cst_10 = arith.constant 8.000000e+00 : f32
    %17 = vector.broadcast %cst_10 : f32 to vector<2x128xf32>
    %18 = arith.divf %16, %17 : vector<2x128xf32>
    %c0_11 = arith.constant 0 : index
    %c0_12 = arith.constant 0 : index
    %19 = vector.load %arg11[%c0_11, %c0_12] : memref<2x128xf32, #tpu.memory_space<vmem>>, vector<2x128xf32>
    tpu.vector_store %arg11[%c0_11, %c0_12], %18 {strides = array<i32>} : memref<2x128xf32, #tpu.memory_space<vmem>>, vector<2x128xf32>,
    %c0_13 = arith.constant 0 : index
    %c0_14 = arith.constant 0 : index
    %c0_15 = arith.constant 0 : index
    %20 = vector.load %arg5[%c0_13, %c0_14, %c0_15] : memref<2x8x128xf32, #tpu.memory_space<vmem>>, vector<2x8x128xf32>
    %21 = vector.shape_cast %20 : vector<2x8x128xf32> to vector<16x128xf32>
    %c0_16 = arith.constant 0 : index
    %c0_17 = arith.constant 0 : index
    %22 = vector.load %arg7[%c0_16, %c0_17] : memref<128x128xf32, #tpu.memory_space<vmem>>, vector<128x128xf32>
    %cst_18 = arith.constant dense<0.000000e+00> : vector<16x128xf32>
    %23 = tpu.matmul %21, %22, %cst_18 {dimension_numbers = #tpu.dot_dimension_numbers<[1], [0], [0], [1], [0, 0, 1, 1], [], []>} : vector<16x128xf32>, vector<128x128xf32>, vector<16x128xf32> -> vector<16x128xf32>
    %24 = vector.shape_cast %23 : vector<16x128xf32> to vector<2x8x128xf32>
    %c0_19 = arith.constant 0 : index
    %c0_20 = arith.constant 0 : index
    %25 = vector.load %arg8[%c0_19, %c0_20] : memref<128x128xf32, #tpu.memory_space<vmem>>, vector<128x128xf32>
    %cst_21 = arith.constant dense<0.000000e+00> : vector<16x128xf32>
    %26 = tpu.matmul %21, %25, %cst_21 {dimension_numbers = #tpu.dot_dimension_numbers<[1], [0], [0], [1], [0, 0, 1, 1], [], []>} : vector<16x128xf32>, vector<128x128xf32>, vector<16x128xf32> -> vector<16x128xf32>
    %27 = vector.shape_cast %26 : vector<16x128xf32> to vector<2x8x128xf32>
    %c0_22 = arith.constant 0 : index
    %c0_23 = arith.constant 0 : index
    %28 = vector.load %arg9[%c0_22, %c0_23] : memref<128x128xf32, #tpu.memory_space<vmem>>, vector<128x128xf32>
    %cst_24 = arith.constant dense<0.000000e+00> : vector<16x128xf32>
    %29 = tpu.matmul %21, %28, %cst_24 {dimension_numbers = #tpu.dot_dimension_numbers<[1], [0], [0], [1], [0, 0, 1, 1], [], []>} : vector<16x128xf32>, vector<128x128xf32>, vector<16x128xf32> -> vector<16x128xf32>
    %30 = vector.shape_cast %29 : vector<16x128xf32> to vector<2x8x128xf32>
    "tpu.trace_start"() <{level = 10 : i32, message = "bqd,bkd->bqk"}> : () -> ()
    %cst_25 = arith.constant dense<0.000000e+00> : vector<2x8x8xf32>
    %31 = tpu.matmul %24, %27, %cst_25 {dimension_numbers = #tpu.dot_dimension_numbers<[2], [2], [1], [1], [0, 0, 0, 1, 1, 1], [0], [0]>} : vector<2x8x128xf32>, vector<2x8x128xf32>, vector<2x8x8xf32> -> vector<2x8x8xf32>
    "tpu.trace_stop"() : () -> ()
    %cst_26 = arith.constant 0.0883883461 : f32
    %32 = vector.broadcast %cst_26 : f32 to vector<2x8x8xf32>
    %33 = arith.mulf %31, %32 : vector<2x8x8xf32>
    %c0_27 = arith.constant 0 : index
    %c0_28 = arith.constant 0 : index
    %c0_29 = arith.constant 0 : index
    %34 = vector.load %arg6[%c0_27, %c0_28, %c0_29] : memref<2x1x8xf32, #tpu.memory_space<vmem>>, vector<2x1x8xf32>
    %cst_30 = arith.constant -1.000000e+09 : f32
    %35 = vector.broadcast %cst_30 : f32 to vector<2x1x8xf32>
    %36 = arith.mulf %34, %35 : vector<2x1x8xf32>
    %37 = vector.broadcast %36 : vector<2x1x8xf32> to vector<2x8x8xf32>
    %38 = arith.addf %33, %37 : vector<2x8x8xf32>
    %cst_31 = arith.constant dense<0xFF800000> : vector<2x8xf32>
    %39 = vector.multi_reduction <maximumf>, %38, %cst_31 [2] : vector<2x8x8xf32> to vector<2x8xf32>
    %40 = vector.shape_cast %39 : vector<2x8xf32> to vector<2x8x1xf32>
    %41 = vector.broadcast %40 : vector<2x8x1xf32> to vector<2x8x8xf32>
    %42 = arith.subf %38, %41 : vector<2x8x8xf32>
    %43 = math.exp %42 : vector<2x8x8xf32>
    %cst_32 = arith.constant dense<0.000000e+00> : vector<2x8xf32>
    %44 = vector.multi_reduction <add>, %43, %cst_32 [2] : vector<2x8x8xf32> to vector<2x8xf32>
    %45 = vector.shape_cast %44 : vector<2x8xf32> to vector<2x8x1xf32>
    %46 = tpu.reciprocal %45 {approx = true} : vector<2x8x1xf32> -> vector<2x8x1xf32>
    %47 = vector.broadcast %46 : vector<2x8x1xf32> to vector<2x8x8xf32>
    %48 = arith.mulf %43, %47 : vector<2x8x8xf32>
    "tpu.trace_start"() <{level = 10 : i32, message = "bqk,bkd->bqd"}> : () -> ()
    %cst_33 = arith.constant dense<0.000000e+00> : vector<2x8x128xf32>
    %49 = tpu.matmul %48, %30, %cst_33 {dimension_numbers = #tpu.dot_dimension_numbers<[2], [1], [1], [2], [0, 0, 0, 1, 1, 2], [0], [0]>} : vector<2x8x8xf32>, vector<2x8x128xf32>, vector<2x8x128xf32> -> vector<2x8x128xf32>
    "tpu.trace_stop"() : () -> ()
    %cst_34 = arith.constant dense<0.000000e+00> : vector<2x128xf32>
    %50 = vector.multi_reduction <add>, %49, %cst_34 [1] : vector<2x8x128xf32> to vector<2x128xf32>
    %cst_35 = arith.constant 8.000000e+00 : f32
    %51 = vector.broadcast %cst_35 : f32 to vector<2x128xf32>
    %52 = arith.divf %50, %51 : vector<2x128xf32>
    %c0_36 = arith.constant 0 : index
    %c0_37 = arith.constant 0 : index
    %53 = vector.load %arg10[%c0_36, %c0_37] : memref<128x128xf32, #tpu.memory_space<vmem>>, vector<128x128xf32>
    %cst_38 = arith.constant dense<0.000000e+00> : vector<2x128xf32>
    %54 = tpu.matmul %52, %53, %cst_38 {dimension_numbers = #tpu.dot_dimension_numbers<[1], [0], [0], [1], [0, 0, 1, 1], [], []>} : vector<2x128xf32>, vector<128x128xf32>, vector<2x128xf32> -> vector<2x128xf32>
    %c0_39 = arith.constant 0 : index
    %c0_40 = arith.constant 0 : index
    %55 = vector.load %arg12[%c0_39, %c0_40] : memref<2x128xf32, #tpu.memory_space<vmem>>, vector<2x128xf32>
    tpu.vector_store %arg12[%c0_39, %c0_40], %54 {strides = array<i32>} : memref<2x128xf32, #tpu.memory_space<vmem>>, vector<2x128xf32>,
    return
  }
  func.func @transform_0(%arg0: i32) -> (i32, i32, i32) {
    %c0_i32 = arith.constant 0 : i32
    %c0_i32_0 = arith.constant 0 : i32
    %c0_i32_1 = arith.constant 0 : i32
    %c0_i32_2 = arith.constant 0 : i32
    return %c0_i32, %c0_i32_0, %c0_i32_1 : i32, i32, i32
  }
  func.func @transform_1(%arg0: i32) -> (i32, i32) {
    %c0_i32 = arith.constant 0 : i32
    %c0_i32_0 = arith.constant 0 : i32
    %c0_i32_1 = arith.constant 0 : i32
    return %c0_i32, %c0_i32_0 : i32, i32
  }
  func.func @transform_2(%arg0: i32) -> (i32, i32) {
    %c0_i32 = arith.constant 0 : i32
    %c0_i32_0 = arith.constant 0 : i32
    %c0_i32_1 = arith.constant 0 : i32
    return %c0_i32, %c0_i32_0 : i32, i32
  }
  func.func @transform_3(%arg0: i32) -> (i32, i32) {
    %c0_i32 = arith.constant 0 : i32
    %c0_i32_0 = arith.constant 0 : i32
    %c0_i32_1 = arith.constant 0 : i32
    return %c0_i32, %c0_i32_0 : i32, i32
  }
  func.func @transform_4(%arg0: i32) -> (i32, i32, i32) {
    %c0_i32 = arith.constant 0 : i32
    %c0_i32_0 = arith.constant 0 : i32
    %c0_i32_1 = arith.constant 0 : i32
    %c0_i32_2 = arith.constant 0 : i32
    return %c0_i32, %c0_i32_0, %c0_i32_1 : i32, i32, i32
  }
  func.func @transform_5(%arg0: i32) -> (i32, i32, i32) {
    %c0_i32 = arith.constant 0 : i32
    %c0_i32_0 = arith.constant 0 : i32
    %c0_i32_1 = arith.constant 0 : i32
    %c0_i32_2 = arith.constant 0 : i32
    return %c0_i32, %c0_i32_0, %c0_i32_1 : i32, i32, i32
  }
  func.func @transform_6(%arg0: i32) -> (i32, i32) {
    %c0_i32 = arith.constant 0 : i32
    %c0_i32_0 = arith.constant 0 : i32
    %c0_i32_1 = arith.constant 0 : i32
    return %c0_i32, %c0_i32_0 : i32, i32
  }
  func.func @transform_7(%arg0: i32) -> (i32, i32) {
    %c0_i32 = arith.constant 0 : i32
    %c0_i32_0 = arith.constant 0 : i32
    %c0_i32_1 = arith.constant 0 : i32
    return %c0_i32, %c0_i32_0 : i32, i32
  }
  func.func @transform_8(%arg0: i32) -> (i32, i32) {
    %c0_i32 = arith.constant 0 : i32
    %c0_i32_0 = arith.constant 0 : i32
    %c0_i32_1 = arith.constant 0 : i32
    return %c0_i32, %c0_i32_0 : i32, i32
  }
  func.func @transform_9(%arg0: i32) -> (i32, i32) {
    %c0_i32 = arith.constant 0 : i32
    %c0_i32_0 = arith.constant 0 : i32
    %c0_i32_1 = arith.constant 0 : i32
    return %c0_i32, %c0_i32_0 : i32, i32
  }
  func.func @transform_10(%arg0: i32) -> (i32, i32) {
    %c0_i32 = arith.constant 0 : i32
    %c0_i32_0 = arith.constant 0 : i32
    %c0_i32_1 = arith.constant 0 : i32
    return %c0_i32, %c0_i32_0 : i32, i32
  }
  func.func @transform_11(%arg0: i32) -> (i32, i32) {
    %c0_i32 = arith.constant 0 : i32
    %c0_i32_0 = arith.constant 0 : i32
    %c0_i32_1 = arith.constant 0 : i32
    return %c0_i32, %c0_i32_0 : i32, i32
  }
}

</mosaic_0001>

<bundles_post_ra>
// kernel: clip_forward.1
= control target key start
LH: loop header
LB: loop body
LE: loop exit
PB: predicated region body
PF: predicated region fallthrough
CT: control target
= control target key end

     0   :  { %17 = vsyncpa [#allocation3], 0  ;;  %s992_s0 = inlined_call_operand.vmem [shape: s32[2,8,1], index: 0, kind: input, shape index: {}]   ;;  %s993_s1 = inlined_call_operand.hbm [shape: f32[128,128], index: 1, kind: input, shape index: {}]   ;;  %s994_s2 = inlined_call_operand.hbm [shape: f32[128,128], index: 2, kind: input, shape index: {}]   ;;  %s995_s3 = inlined_call_operand.vmem [shape: f32[1,128], index: 3, kind: input, shape index: {}]   ;;  %s996_s4 = inlined_call_operand.vmem [shape: f32[2,8,128], index: 4, kind: input, shape index: {}]   ;;  %s997_s5 = inlined_call_operand.vmem [shape: f32[2,1,8], index: 5, kind: input, shape index: {}]   ;;  %s998_s6 = inlined_call_operand.hbm [shape: f32[128,128], index: 6, kind: input, shape index: {}]   ;;  %s999_s7 = inlined_call_operand.hbm [shape: f32[128,128], index: 7, kind: input, shape index: {}]   ;;  %s1000_s8 = inlined_call_operand.hbm [shape: f32[128,128], index: 8, kind: input, shape index: {}]   ;;  %s1001_s9 = inlined_call_operand.hbm [shape: f32[128,128], index: 9, kind: input, shape index: {}]   ;;  %s1002_s10 = inlined_call_operand.hbm [shape: f32[2,128], index: 10, kind: output, shape index: {0}]   ;;  %s1003_s11 = inlined_call_operand.hbm [shape: f32[2,128], index: 11, kind: output, shape index: {1}]  }
   0x1   :  { %18 = vsyncpa [#allocation6], 0 }
   0x2   :  { %19 = vsyncpa [#allocation9], 0 }
   0x3   :  { %20 = vsyncpa [#allocation12], 0 }
   0x4   :  { %21 = vsyncpa [#allocation4], 0 }
   0x5   :  { %22 = vsyncpa [#allocation15], 0  ;;  %s42_s19 = sshll.u32 %s994_s2, 4  ;;  %s832_s20 = smov [#allocation5]   ;;  %s43_s19 = int_to_ptr.hbm [resolvable:$true] %s42_s19 }
   0x6   :  { %s44_s21 = sshll.u32 %s832_s20, 4  ;;  %s74_s24 = sshll.u32 %s999_s7, 4  ;;  %s45_s21 = int_to_ptr.vmem [resolvable:$true] %s44_s21  ;;  %s75_s24 = int_to_ptr.hbm [resolvable:$true] %s74_s24 }
   0x7   :  { %s833_s25 = smov 128   ;;  %s834_s26 = smov 8  }
   0x8   :  { %50 = dma.hbm_to_vmem [thread:$0]  %s43_s19, 2048, %s45_s21, [#allocation6], %s833_s25, %s833_s25, %s834_s26  }
   0x9   :  { %s835_s27 = smov [#allocation8]   ;;  %s29_s2 = sshll.u32 %s993_s1, 4  ;;  %s30_s2 = int_to_ptr.hbm [resolvable:$true] %s29_s2 }
   0xa   :  { %s76_s28 = sshll.u32 %s835_s27, 4  ;;  %s61_s13 = sshll.u32 %s998_s6, 4  ;;  %s77_s28 = int_to_ptr.vmem [resolvable:$true] %s76_s28  ;;  %s62_s13 = int_to_ptr.hbm [resolvable:$true] %s61_s13 }
   0xb   :  { %82 = dma.hbm_to_vmem [thread:$0]  %s75_s24, 2048, %s77_s28, [#allocation9], %s833_s25, %s833_s25, %s834_s26  }
   0xc   :  { %s836_s14 = smov [#allocation2]   ;;  %s837_s16 = smov [#allocation7]  }
   0xd   :  { %s31_s15 = sshll.u32 %s836_s14, 4  ;;  %s63_s1 = sshll.u32 %s837_s16, 4  ;;  %s32_s15 = int_to_ptr.vmem [resolvable:$true] %s31_s15  ;;  %s64_s1 = int_to_ptr.vmem [resolvable:$true] %s63_s1 }
   0xe   :  { %37 = dma.hbm_to_vmem [thread:$0]  %s30_s2, 2048, %s32_s15, [#allocation3], %s833_s25, %s833_s25, %s834_s26  }
   0xf   :  { %s87_s19 = sshll.u32 %s1000_s8, 4  ;;  %s100_s21 = sshll.u32 %s1001_s9, 4  ;;  %s88_s19 = int_to_ptr.hbm [resolvable:$true] %s87_s19  ;;  %s101_s21 = int_to_ptr.hbm [resolvable:$true] %s100_s21 }
  0x10   :  { %69 = dma.hbm_to_vmem [thread:$0]  %s62_s13, 2048, %s64_s1, [#allocation6], %s833_s25, %s833_s25, %s834_s26  }
  0x11   :  { %s838_s22 = smov [#allocation10]   ;;  %s839_s24 = smov [#allocation11]  }
  0x12   :  { %s89_s23 = sshll.u32 %s838_s22, 4  ;;  %s102_s8 = sshll.u32 %s839_s24, 4  ;;  %s90_s23 = int_to_ptr.vmem [resolvable:$true] %s89_s23  ;;  %s103_s8 = int_to_ptr.vmem [resolvable:$true] %s102_s8 }
  0x13   :  { %95 = dma.hbm_to_vmem [thread:$0]  %s88_s19, 2048, %s90_s23, [#allocation9], %s833_s25, %s833_s25, %s834_s26  }
  0x14   :  { %108 = dma.hbm_to_vmem [thread:$0]  %s101_s21, 2048, %s103_s8, [#allocation12], %s833_s25, %s833_s25, %s834_s26  }
  0x15   :  { %820 = dma.done.wait [#allocation3], 2048  }
  0x16   :  { %821 = vsyncadd [#allocation3], 4294965248 }
  0x17   :  { %822 = dma.done.wait [#allocation6], 4096  }
  0x18   :  { %823 = vsyncadd [#allocation6], 4294963200 }
  0x19   :  { %824 = dma.done.wait [#allocation9], 4096  }
  0x1a   :  { %825 = vsyncadd [#allocation9], 4294963200 }
  0x1b   :  { %826 = dma.done.wait [#allocation12], 2048  }
  0x1c   :  { %827 = vsyncadd [#allocation12], 4294965248  ;;  %v840_v0 = vmov 0   ;;  %v133_v1 = vld [vmem:[%s992_s0] sm:$0xff]  ;;  %v316_v2 = vld [vmem:[#allocation8 + $0x78] sm:$0xff]  ;;  %v135_v62 = vlaneseq  ;;  %vm433_vm2 = vcmask 64512  }
  0x1d   :  { %612 = vset.pattern.permute.xlu0 %v840_v0  ;;  %317 = vmatpush.msra.mxu3 %v316_v2  ;;  %v315_v3 = vld [vmem:[#allocation8 + $0x70] sm:$0xff]  ;;  %v314_v4 = vld [vmem:[#allocation8 + $0x68] sm:$0xff]  ;;  %v164_v5 = vld [vmem:[#allocation2 + $0x78] sm:$0xff]  ;;  %vm256_vm4 = vcmask 1041409   ;;  %s564_s1 = sshll.u32 %s1002_s10, 4  ;;  %s844_s17 = smov [#allocation14]   ;;  %s565_s1 = int_to_ptr.hbm [resolvable:$true] %s564_s1 }
  0x1e   :  { %138 = vperm.xlu0 %612, %v133_v1   ;;  %165 = vmatpush.msra.mxu0 %v164_v5  ;;  %v163_v6 = vld [vmem:[#allocation2 + $0x70] sm:$0xff]  ;;  %v313_v7 = vld [vmem:[#allocation8 + $0x60] sm:$0xff]  ;;  %v162_v8 = vld [vmem:[#allocation2 + $0x68] sm:$0xff]  ;;  %v136_v1 = vand.u32 127, %v135_v62  ;;  %v841_v5 = vmov 1.0   ;;  %s573_s18 = sshll.u32 %s844_s17, 4  ;;  %s574_s18 = int_to_ptr.vmem [resolvable:$true] %s573_s18 }
  0x1f   :  { %318 = vmatpush.msra.mxu3 %v315_v3  ;;  %v277_v9 = vld [vmem:[#allocation7 + $0x78] sm:$0xff]  ;;  %v276_v10 = vld [vmem:[#allocation7 + $0x70] sm:$0xff]  ;;  %v134_v11 = vld [vmem:[%s992_s0 + $0x8] sm:$0xff]  ;;  %s575_s20 = sshll.u32 %s1003_s11, 4  ;;  %s576_s20 = int_to_ptr.hbm [resolvable:$true] %s575_s20 }
  0x20   :  { %166 = vmatpush.msra.mxu0 %v163_v6  ;;  %v312_v12 = vld [vmem:[#allocation8 + $0x58] sm:$0xff]  ;;  %278 = vmatpush.msra.mxu2 %v277_v9  ;;  %v161_v13 = vld [vmem:[#allocation2 + $0x60] sm:$0xff]  ;;  %v275_v14 = vld [vmem:[#allocation7 + $0x68] sm:$0xff] }
  0x21   :  { %319 = vmatpush.msra.mxu3 %v314_v4  ;;  %v311_v15 = vld [vmem:[#allocation8 + $0x50] sm:$0xff]  ;;  %v160_v16 = vld [vmem:[#allocation2 + $0x58] sm:$0xff]  ;;  %v274_v17 = vld [vmem:[#allocation7 + $0x60] sm:$0xff] }
  0x22   :  { %167 = vmatpush.msra.mxu0 %v162_v8  ;;  %279 = vmatpush.msra.mxu2 %v276_v10  ;;  %v310_v18 = vld [vmem:[#allocation8 + $0x48] sm:$0xff]  ;;  %v159_v19 = vld [vmem:[#allocation2 + $0x50] sm:$0xff]  ;;  %v273_v20 = vld [vmem:[#allocation7 + $0x58] sm:$0xff] }
  0x23   :  { %320 = vmatpush.msra.mxu3 %v313_v7  ;;  %v309_v21 = vld [vmem:[#allocation8 + $0x40] sm:$0xff]  ;;  %v158_v22 = vld [vmem:[#allocation2 + $0x48] sm:$0xff]  ;;  %v272_v23 = vld [vmem:[#allocation7 + $0x50] sm:$0xff] }
  0x24   :  { %168 = vmatpush.msra.mxu0 %v161_v13  ;;  %280 = vmatpush.msra.mxu2 %v275_v14  ;;  %v308_v24 = vld [vmem:[#allocation8 + $0x38] sm:$0xff]  ;;  %v157_v25 = vld [vmem:[#allocation2 + $0x40] sm:$0xff]  ;;  %v271_v26 = vld [vmem:[#allocation7 + $0x48] sm:$0xff] }
  0x25   :  { %321 = vmatpush.msra.mxu3 %v312_v12  ;;  %v307_v27 = vld [vmem:[#allocation8 + $0x30] sm:$0xff]  ;;  %v156_v28 = vld [vmem:[#allocation2 + $0x38] sm:$0xff]  ;;  %v270_v29 = vld [vmem:[#allocation7 + $0x40] sm:$0xff] }
  0x26   :  { %141 = vperm.xlu0 %612, %v134_v11   ;;  %169 = vmatpush.msra.mxu0 %v160_v16  ;;  %v306_v30 = vld [vmem:[#allocation8 + $0x28] sm:$0xff]  ;;  %v155_v31 = vld [vmem:[#allocation2 + $0x30] sm:$0xff]  ;;  %v269_v32 = vld [vmem:[#allocation7 + $0x38] sm:$0xff] }
  0x27   :  { %322 = vmatpush.msra.mxu3 %v311_v15  ;;  %281 = vmatpush.msra.mxu2 %v274_v17  ;;  %v305_v33 = vld [vmem:[#allocation8 + $0x20] sm:$0xff]  ;;  %v154_v34 = vld [vmem:[#allocation2 + $0x28] sm:$0xff]  ;;  %v268_v35 = vld [vmem:[#allocation7 + $0x30] sm:$0xff] }
  0x28   :  { %170 = vmatpush.msra.mxu0 %v159_v19  ;;  %v304_v36 = vld [vmem:[#allocation8 + $0x18] sm:$0xff]  ;;  %v153_v37 = vld [vmem:[#allocation2 + $0x20] sm:$0xff]  ;;  %v267_v38 = vld [vmem:[#allocation7 + $0x28] sm:$0xff] }
  0x29   :  { %323 = vmatpush.msra.mxu3 %v310_v18  ;;  %282 = vmatpush.msra.mxu2 %v273_v20  ;;  %v303_v39 = vld [vmem:[#allocation8 + $0x10] sm:$0xff]  ;;  %v152_v40 = vld [vmem:[#allocation2 + $0x18] sm:$0xff]  ;;  %v266_v41 = vld [vmem:[#allocation7 + $0x20] sm:$0xff] }
  0x2a   :  { %171 = vmatpush.msra.mxu0 %v158_v22  ;;  %v302_v42 = vld [vmem:[#allocation8 + $0x8] sm:$0xff]  ;;  %v151_v43 = vld [vmem:[#allocation2 + $0x10] sm:$0xff]  ;;  %v265_v44 = vld [vmem:[#allocation7 + $0x18] sm:$0xff] }
  0x2b   :  { %324 = vmatpush.msra.mxu3 %v309_v21  ;;  %283 = vmatpush.msra.mxu2 %v272_v23  ;;  %v301_v45 = vld [vmem:[#allocation8] sm:$0xff]  ;;  %v150_v47 = vld [vmem:[#allocation2 + $0x8] sm:$0xff]  ;;  %v264_v50 = vld [vmem:[#allocation7 + $0x10] sm:$0xff]  ;;  %v842_v23 = vmov 8.0  }
  0x2c   :  { %172 = vmatpush.msra.mxu0 %v157_v25  ;;  %v950_v46 = vld [vmem:[%s996_s4] sm:$0xff]  ;;  %v956_v48 = vld [vmem:[%s996_s4 + $0x8] sm:$0xff]  ;;  %v203_v53 = vld [vmem:[#allocation5 + $0x78] sm:$0xff]  ;;  %614 = vrcp.f32 %v842_v23 }
  0x2d   :  { %325 = vmatpush.msra.mxu3 %v308_v24  ;;  %284 = vmatpush.msra.mxu2 %v271_v26  ;;  %v149_v49 = vld [vmem:[#allocation2] sm:$0xff]  ;;  %v263_v51 = vld [vmem:[#allocation7 + $0x8] sm:$0xff]  ;;  %v202_v54 = vld [vmem:[#allocation5 + $0x70] sm:$0xff] }
  0x2e   :  { %173 = vmatpush.msra.mxu0 %v156_v28  ;;  %v262_v52 = vld [vmem:[#allocation7] sm:$0xff]  ;;  %208 = vmatpush.msra.mxu1 %v203_v53  ;;  %v201_v55 = vld [vmem:[#allocation5 + $0x68] sm:$0xff]  ;;  %v199_v57 = vld [vmem:[#allocation5 + $0x58] sm:$0xff] }
  0x2f   :  { %326 = vmatpush.msra.mxu3 %v307_v27  ;;  %285 = vmatpush.msra.mxu2 %v270_v29  ;;  %v200_v56 = vld [vmem:[#allocation5 + $0x60] sm:$0xff]  ;;  %v198_v58 = vld [vmem:[#allocation5 + $0x50] sm:$0xff]  ;;  %v197_v59 = vld [vmem:[#allocation5 + $0x48] sm:$0xff] }
  0x30   :  { %174 = vmatpush.msra.mxu0 %v155_v31  ;;  %209 = vmatpush.msra.mxu1 %v202_v54  ;;  %v196_v60 = vld [vmem:[#allocation5 + $0x40] sm:$0xff]  ;;  %v195_v61 = vld [vmem:[#allocation5 + $0x38] sm:$0xff]  ;;  %v194_v63 = vld [vmem:[#allocation5 + $0x30] sm:$0xff] }
  0x31   :  { %327 = vmatpush.msra.mxu3 %v306_v30  ;;  %286 = vmatpush.msra.mxu2 %v269_v32  ;;  %v193_v0 = vld [vmem:[#allocation5 + $0x28] sm:$0xff]  ;;  %v192_v2 = vld [vmem:[#allocation5 + $0x20] sm:$0xff]  ;;  %v191_v4 = vld [vmem:[#allocation5 + $0x18] sm:$0xff] }
  0x32   :  { %175 = vmatpush.msra.mxu0 %v154_v34  ;;  %210 = vmatpush.msra.mxu1 %v201_v55  ;;  %v190_v6 = vld [vmem:[#allocation5 + $0x10] sm:$0xff]  ;;  %v189_v7 = vld [vmem:[#allocation5 + $0x8] sm:$0xff]  ;;  %v188_v8 = vld [vmem:[#allocation5] sm:$0xff]  ;;  %v615_v26 = vpop.eup %614 }
  0x33   :  { %328 = vmatpush.msra.mxu3 %v305_v33  ;;  %287 = vmatpush.msra.mxu2 %v268_v35  ;;  %v613_v16 = vld [vmem:[%s995_s3] ss:$0 sm:$0xff]  ;;  %v355_v17 = vld [vmem:[#allocation10 + $0x78] sm:$0xff]  ;;  %v354_v18 = vld [vmem:[#allocation10 + $0x70] sm:$0xff]  ;;  %v246_v35 = vmul.f32 8.0, %v615_v26  ;;  %vm250_vm3 = vweird.f32 %v615_v26 }
  0x34   :  { %176 = vmatpush.msra.mxu0 %v153_v37  ;;  %211 = vmatpush.msra.mxu1 %v200_v56  ;;  %v353_v20 = vld [vmem:[#allocation10 + $0x68] sm:$0xff]  ;;  %v352_v22 = vld [vmem:[#allocation10 + $0x60] sm:$0xff]  ;;  %v351_v24 = vld [vmem:[#allocation10 + $0x58] sm:$0xff] }
  0x35   :  { %329 = vmatpush.msra.mxu3 %v304_v36  ;;  %288 = vmatpush.msra.mxu2 %v267_v38  ;;  %v350_v25 = vld [vmem:[#allocation10 + $0x50] sm:$0xff]  ;;  %v421_v28 = vld [vmem:[%s997_s5] sm:$0x1]  ;;  %v349_v29 = vld [vmem:[#allocation10 + $0x48] sm:$0xff] }
  0x36   :  { %177 = vmatpush.msra.mxu0 %v152_v40  ;;  %212 = vmatpush.msra.mxu1 %v199_v57  ;;  %v348_v33 = vld [vmem:[#allocation10 + $0x40] sm:$0xff]  ;;  %v423_v34 = vmul.f32 -1e+09, %v421_v28  ;;  %v347_v38 = vld [vmem:[#allocation10 + $0x38] sm:$0xff]  ;;  %v346_v40 = vld [vmem:[#allocation10 + $0x30] sm:$0xff] }
  0x37   :  { %330 = vmatpush.msra.mxu3 %v303_v39  ;;  %289 = vmatpush.msra.mxu2 %v266_v41  ;;  %v422_v37 = vld [vmem:[%s997_s5 + $0x1] sm:$0x1]  ;;  %v526_v28 = vld [vmem:[#allocation11 + $0x50] sm:$0xff]  ;;  %s843_s5 = smov [#allocation13]  }
  0x38   :  { %178 = vmatpush.msra.mxu0 %v151_v43  ;;  %213 = vmatpush.msra.mxu1 %v198_v58  ;;  %v427_v41 = vperm.slane %v423_v34, 0  ;;  %v247_v43 = vsub.f32 1.0, %v246_v35  ;;  %v344_v53 = vld [vmem:[#allocation10 + $0x20] sm:$0xff]  ;;  %s562_s14 = sshll.u32 %s843_s5, 4  ;;  %s563_s14 = int_to_ptr.vmem [resolvable:$true] %s562_s14 }
  0x39   :  { %331 = vmatpush.msra.mxu3 %v302_v42  ;;  %290 = vmatpush.msra.mxu2 %v265_v44  ;;  %v424_v42 = vmul.f32 -1e+09, %v422_v37  ;;  %v523_v37 = vld [vmem:[#allocation11 + $0x38] sm:$0xff] }
  0x3a   :  { %179 = vmatpush.msra.mxu0 %v150_v47  ;;  %214 = vmatpush.msra.mxu1 %v197_v59  ;;  %v345_v47 = vld [vmem:[#allocation10 + $0x28] sm:$0xff]  ;;  %v248_v57 = vmul.f32 %v615_v26, %v247_v43  ;;  %v343_v59 = vld [vmem:[#allocation10 + $0x18] sm:$0xff] }
  0x3b   :  { %332 = vmatpush.msra.mxu3 %v301_v45  ;;  %291 = vmatpush.msra.mxu2 %v264_v50  ;;  %v428_v56 = vperm.slane %v424_v42, 0  ;;  %v518_v42 = vld [vmem:[#allocation11 + $0x10] sm:$0xff]  ;;  %v517_v43 = vld [vmem:[#allocation11 + $0x8] sm:$0xff] }
  0x3c   :  { %333 = vmatmul.f32.vlgmr.msra.gmra.mxu3 %v950_v46  ;;  %180 = vmatpush.msra.mxu0 %v149_v49 }
  0x3d   :  { %292 = vmatpush.msra.mxu2 %v263_v51  ;;  %215 = vmatpush.msra.mxu1 %v196_v60 }
  0x3e   :  { %356 = vmatpush.msrb.mxu0 %v355_v17 }
  0x3f   :  { %293 = vmatpush.msra.mxu2 %v262_v52  ;;  %216 = vmatpush.msra.mxu1 %v195_v61 }
  0x40   :  { %294 = vmatmul.f32.vlgmr.msra.gmra.mxu2 %v950_v46  ;;  %357 = vmatpush.msrb.mxu0 %v354_v18 }
  0x41   :  { %217 = vmatpush.msra.mxu1 %v194_v63  ;;  %v342_v63 = vld [vmem:[#allocation10 + $0x10] sm:$0xff] }
  0x42   :  { %358 = vmatpush.msrb.mxu0 %v353_v20 }
  0x43   :  { %218 = vmatpush.msra.mxu1 %v193_v0 }
  0x44   :  { %336 = vmatmul.f32.gmra.mxu3 %v956_v48  ;;  %359 = vmatpush.msrb.mxu0 %v352_v22 }
  0x45   :  { %219 = vmatpush.msra.mxu1 %v192_v2 }
  0x46   :  { %360 = vmatpush.msrb.mxu0 %v351_v24  ;;  %v530_v24 = vld [vmem:[#allocation11 + $0x70] sm:$0xff] }
  0x47   :  { %220 = vmatpush.msra.mxu1 %v191_v4 }
  0x48   :  { %297 = vmatmul.f32.gmra.mxu2 %v956_v48  ;;  %361 = vmatpush.msrb.mxu0 %v350_v25  ;;  %v529_v25 = vld [vmem:[#allocation11 + $0x68] sm:$0xff] }
  0x49   :  { %221 = vmatpush.msra.mxu1 %v190_v6 }
  0x4a   :  { %362 = vmatpush.msrb.mxu0 %v349_v29  ;;  %v525_v29 = vld [vmem:[#allocation11 + $0x48] sm:$0xff] }
  0x4b   :  { %222 = vmatpush.msra.mxu1 %v189_v7 }
  0x4c   :  { %363 = vmatpush.msrb.mxu0 %v348_v33 }
  0x4d   :  { %223 = vmatpush.msra.mxu1 %v188_v8 }
  0x4e   :  { %364 = vmatpush.msrb.mxu0 %v347_v38  ;;  %v522_v38 = vld [vmem:[#allocation11 + $0x30] sm:$0xff] }
  0x50   :  { %365 = vmatpush.msrb.mxu0 %v346_v40  ;;  %v520_v40 = vld [vmem:[#allocation11 + $0x20] sm:$0xff] }
  0x52   :  { %366 = vmatpush.msrb.mxu0 %v345_v47 }
  0x54   :  { %367 = vmatpush.msrb.mxu0 %v344_v53 }
  0x56   :  { %368 = vmatpush.msrb.mxu0 %v343_v59 }
  0x58   :  { %369 = vmatpush.msrb.mxu0 %v342_v63 }
  0x90   :  { %v139_v3 = vpop.permute.xlu0 %138 }
  0x91   :  { %vm143_vm0 = vcmp.eq.s32.totalorder %v136_v1, %v139_v3 }
  0x92   :  { %595 = vmatmul.msk.f32.vlgmr.msra.gmra.mxu0 %vm143_vm0, %v841_v5 }
  0x98   :  { %v142_v9 = vpop.permute.xlu0 %141 }
  0x99   :  { %vm144_vm1 = vcmp.eq.s32.totalorder %v136_v1, %v142_v9  ;;  %v249_v1 = vadd.f32 %v615_v26, %v248_v57 }
  0x9a   :  { %596 = vmatmul.msk.f32.gmra.mxu0 %vm144_vm1, %v841_v5 }
  0x9b   :  { %v972_v6 = vsel %vm250_vm3, %v615_v26, %v249_v1  ;;  %v528_v26 = vld [vmem:[#allocation11 + $0x60] sm:$0xff] }
  0xbf   :  { %v334_v10 = vpop.f32.mrf.mxu3 }
  0xc0   :  { %394 = vmatpush.xpose.msrb.mxu1 %v334_v10 }
  0xc3   :  { %v295_v12 = vpop.f32.mrf.mxu2 }
  0xc7   :  { %v337_v11 = vpop.f32.mrf.mxu3 }
  0xc8   :  { %414 = vmatpush.xpose.msrb.mxu3 %v337_v11  ;;  %v341_v11 = vld [vmem:[#allocation10 + $0x8] sm:$0xff] }
  0xc9   :  { %370 = vmatpush.msrb.mxu0 %v341_v11 }
  0xcb   :  { %v298_v13 = vpop.f32.mrf.mxu2 }
  0xcc   :  { %415 = vmatmul.f32.vlgmr.msrb.gmra.mxu3 %v298_v13 }
 0x10f   :  { %v182_v14 = vpop.f32.mrf.mxu0 }
 0x110   :  { %224 = vmatmul.f32.vlgmr.msra.gmra.mxu1 %v182_v14 }
 0x117   :  { %v185_v15 = vpop.f32.mrf.mxu0 }
 0x118   :  { %227 = vmatmul.f32.gmra.mxu1 %v185_v15 }
 0x120   :  { %395 = vmatmul.f32.vlgmr.msrb.gmra.mxu1 %v295_v12  ;;  %v340_v12 = vld [vmem:[#allocation10] sm:$0xff] }
 0x121   :  { %371 = vmatpush.msrb.mxu0 %v340_v12 }
 0x122   :  { %372 = vmatmul.f32.vlgmr.msrb.gmra.mxu0 %v950_v46 }
 0x12a   :  { %375 = vmatmul.f32.gmra.mxu0 %v956_v48  ;;  %v531_v48 = vld [vmem:[#allocation11 + $0x78] sm:$0xff] }
 0x12b   :  { %536 = vmatpush.msrb.mxu2 %v531_v48 }
 0x12d   :  { %537 = vmatpush.msrb.mxu2 %v530_v24 }
 0x12f   :  { %538 = vmatpush.msrb.mxu2 %v529_v25 }
 0x131   :  { %539 = vmatpush.msrb.mxu2 %v528_v26 }
 0x14f   :  { %v416_v45 = vpop.f32.mrf.mxu3 }
 0x150   :  { %v420_v55 = vmul.f32 0.088388346, %v416_v45 }
 0x152   :  { %v432_v0 = vadd.f32 %v428_v56, %v420_v55 }
 0x154   :  { %v437_v5 = vsel %vm433_vm2, %v432_v0, -inf }
 0x18d   :  { %v225_v19 = vpop.f32.mrf.mxu1 }
 0x18e   :  { %v226_v21 = vadd.f32 %v613_v16, %v225_v19 }
 0x190   :  { %616 = vtanh.f32 %v226_v21 }
 0x195   :  { %v228_v27 = vpop.f32.mrf.mxu1 }
 0x196   :  { %v617_v30 = vpop.eup %616  ;;  %v229_v31 = vadd.f32 %v613_v16, %v228_v27  ;;  %v527_v27 = vld [vmem:[#allocation11 + $0x58] sm:$0xff] }
 0x197   :  { %v233_v32 = vrot.slane %v617_v30, 4  ;;  %540 = vmatpush.msrb.mxu2 %v527_v27 }
 0x198   :  { %618 = vtanh.f32 %v229_v31 }
 0x199   :  { %v234_v36 = vadd.f32 %v617_v30, %v233_v32  ;;  %541 = vmatpush.msrb.mxu2 %v526_v28 }
 0x19b   :  { %v235_v39 = vrot.slane %v234_v36, 2  ;;  %542 = vmatpush.msrb.mxu2 %v525_v29 }
 0x19d   :  { %v396_v44 = vpop.f32.mrf.mxu1  ;;  %v236_v51 = vadd.f32 %v235_v39, %v234_v36  ;;  %v524_v36 = vld [vmem:[#allocation11 + $0x40] sm:$0xff]  ;;  %v521_v39 = vld [vmem:[#allocation11 + $0x28] sm:$0xff] }
 0x19e   :  { %v619_v49 = vpop.eup %618  ;;  %v419_v50 = vmul.f32 0.088388346, %v396_v44  ;;  %543 = vmatpush.msrb.mxu2 %v524_v36  ;;  %v516_v44 = vld [vmem:[#allocation11] sm:$0xff] }
 0x19f   :  { %v239_v52 = vrot.slane %v619_v49, 4  ;;  %v237_v61 = vrot.slane %v236_v51, 1  ;;  %v373_v23 = vpop.f32.mrf.mxu0 }
 0x1a0   :  { %v431_v54 = vadd.f32 %v427_v41, %v419_v50  ;;  %474 = vmatpush.msra.mxu3 %v373_v23  ;;  %544 = vmatpush.msrb.mxu2 %v523_v37  ;;  %v519_v41 = vld [vmem:[#allocation11 + $0x18] sm:$0xff] }
 0x1a1   :  { %v240_v58 = vadd.f32 %v619_v49, %v239_v52  ;;  %v238_v4 = vadd.f32 %v237_v61, %v236_v51 }
 0x1a2   :  { %v434_v60 = vsel %vm433_vm2, %v431_v54, -inf  ;;  %545 = vmatpush.msrb.mxu2 %v522_v38 }
 0x1a3   :  { %v241_v62 = vrot.slane %v240_v58, 2  ;;  %435 = vmax.xlane.f32.xlu1 %v434_v60  ;;  %v252_v8 = vmul.f32 %v972_v6, %v238_v4 }
 0x1a4   :  { %546 = vmatpush.msrb.mxu2 %v521_v39 }
 0x1a5   :  { %v242_v2 = vadd.f32 %v241_v62, %v240_v58 }
 0x1a6   :  { %547 = vmatpush.msrb.mxu2 %v520_v40 }
 0x1a7   :  { %v243_v3 = vrot.slane %v242_v2, 1  ;;  %v376_v46 = vpop.f32.mrf.mxu0 }
 0x1a8   :  { %497 = vmatpush.msra.mxu1 %v376_v46  ;;  %548 = vmatpush.msrb.mxu2 %v519_v41 }
 0x1a9   :  { %v244_v7 = vadd.f32 %v243_v3, %v242_v2 }
 0x1aa   :  { %549 = vmatpush.msrb.mxu2 %v518_v42 }
 0x1ab   :  { %438 = vmax.xlane.f32.xlu1 %v437_v5  ;;  %v253_v9 = vmul.f32 %v972_v6, %v244_v7 }
 0x1ac   :  { %550 = vmatpush.msrb.mxu2 %v517_v43 }
 0x1ad   :  { %v257_v10 = vsel %vm256_vm4, %v253_v9, %v252_v8 }
 0x1ae   :  { %259 = vst [vmem:[#allocation13] sm:$0x3] %v257_v10  ;;  %551 = vmatpush.msrb.mxu2 %v516_v44 }
 0x1af   :  { %567 = dma.vmem_to_hbm [thread:$0]  %s563_s14, 32, %s565_s1, [#allocation4]  }
 0x216   :  { %v436_v13 = vpop.xlane.xlu1 %435 }
 0x217   :  { %v440_v14 = vsub.f32 %v431_v54, %v436_v13 }
 0x219   :  { %v442_v15 = vmul.f32 1.442695, %v440_v14 }
 0x21b   :  { %620 = vpow2.f32 %v442_v15 }
 0x21e   :  { %v439_v16 = vpop.xlane.xlu1 %438 }
 0x21f   :  { %v441_v17 = vsub.f32 %v432_v0, %v439_v16 }
 0x221   :  { %v621_v18 = vpop.eup %620  ;;  %v444_v19 = vmul.f32 1.442695, %v441_v17 }
 0x222   :  { %v446_v20 = vsel %vm433_vm2, %v621_v18, 0.0 }
 0x223   :  { %622 = vpow2.f32 %v444_v19  ;;  %447 = vadd.xlane.f32.xlu2 %v446_v20 }
 0x229   :  { %v623_v21 = vpop.eup %622 }
 0x22a   :  { %v449_v22 = vsel %vm433_vm2, %v623_v21, 0.0 }
 0x22b   :  { %450 = vadd.xlane.f32.xlu2 %v449_v22 }
 0x296   :  { %v448_v30 = vpop.xlane.xlu2 %447 }
 0x297   :  { %624 = vrcp.f32 %v448_v30 }
 0x29d   :  { %v625_v31 = vpop.eup %624 }
 0x29e   :  { %v454_v32 = vmul.f32 %v625_v31, %v621_v18  ;;  %v451_v33 = vpop.xlane.xlu2 %450 }
 0x29f   :  { %626 = vrcp.f32 %v451_v33 }
 0x2a0   :  { %597 = vmatmul.msk.f32.vlgmr.msra.gmra.mxu3 %vm433_vm2, %v454_v32 }
 0x2a5   :  { %v627_v34 = vpop.eup %626 }
 0x2a6   :  { %v455_v35 = vmul.f32 %v627_v34, %v623_v21 }
 0x2a8   :  { %598 = vmatmul.msk.f32.vlgmr.msra.gmra.mxu1 %vm433_vm2, %v455_v35 }
 0x323   :  { %v476_v45 = vpop.f32.mrf.mxu3 }
 0x324   :  { %v502_v47 = vrot.slane %v476_v45, 4 }
 0x325   :  { %v499_v49 = vpop.f32.mrf.mxu1 }
 0x326   :  { %v503_v50 = vadd.f32 %v502_v47, %v476_v45  ;;  %v508_v51 = vrot.slane %v499_v49, 4 }
 0x328   :  { %v504_v52 = vrot.slane %v503_v50, 2  ;;  %v509_v53 = vadd.f32 %v508_v51, %v499_v49 }
 0x32a   :  { %v505_v54 = vadd.f32 %v504_v52, %v503_v50  ;;  %v510_v55 = vrot.slane %v509_v53, 2 }
 0x32c   :  { %v506_v56 = vrot.slane %v505_v54, 1  ;;  %v511_v57 = vadd.f32 %v510_v55, %v509_v53 }
 0x32e   :  { %v507_v58 = vadd.f32 %v506_v56, %v505_v54  ;;  %v512_v59 = vrot.slane %v511_v57, 1 }
 0x330   :  { %v513_v60 = vadd.f32 %v512_v59, %v511_v57  ;;  %v514_v61 = vmul.f32 %v507_v58, %v972_v6 }
 0x332   :  { %v515_v62 = vmul.f32 %v513_v60, %v972_v6 }
 0x334   :  { %v534_v63 = vsel %vm256_vm4, %v515_v62, %v514_v61 }
 0x335   :  { %552 = vmatmul.f32.vlgmr.msrb.gmra.mxu2 %v534_v63 }
 0x3b8   :  { %v553_v0 = vpop.f32.mrf.mxu2 }
 0x3b9   :  { %556 = vst [vmem:[#allocation14] sm:$0x3] %v553_v0 }
 0x3ba   :  { %578 = dma.vmem_to_hbm [thread:$0]  %s574_s18, 32, %s576_s20, [#allocation15]  }
 0x3bb   :  { %828 = dma.done.wait [#allocation4], 32  }
 0x3bc   :  { %829 = vsyncadd [#allocation4], 4294967264 }
 0x3bd   :  { %830 = dma.done.wait [#allocation15], 32  }
 0x3be   :  { %831 = vsyncadd [#allocation15], 4294967264 }
 0x3bf   :  { %587 = vsyncpa [#allocation3], 1 }
 0x3c0   :  { %588 = vsyncpa [#allocation6], 1 }
 0x3c1   :  { %589 = vsyncpa [#allocation9], 1 }
 0x3c2   :  { %590 = vsyncpa [#allocation12], 1 }
 0x3c3   :  { %591 = vsyncpa [#allocation4], 1 }
 0x3c4   :  { %592 = vsyncpa [#allocation15], 1 }

</bundles_post_ra>
